<compile_context>
chip_gen: v6e
topology: v6e:2x2x1
jax: 0.10.0
libtpu: 0.0.40
codegen_flags: <defaults>
</compile_context>

<pallas_src>
import functools

import jax
import jax.numpy as jnp
from jax import lax
from jax.experimental import pallas as pl
from jax.experimental.pallas import tpu as pltpu


# ----------------------------- kernel helpers ------------------------------

def _pairwise_max(taps):
    """Pairwise-tree max over a list of equally-shaped arrays (VALU ILP)."""
    taps = list(taps)
    while len(taps) > 1:
        nxt = [jnp.maximum(taps[i], taps[i + 1])
               for i in range(0, len(taps) - 1, 2)]
        if len(taps) % 2 == 1:
            nxt.append(taps[-1])
        taps = nxt
    return taps[0]


def _combine_pool_kernel(slab_ref, w_big_ref, w_rm_ref, out_ref, *,
                         pool_slots, C):
    # slab_ref: (1, F, TP) bf16 patch slab (im2col taps [+ pool taps if k>3]).
    # avg + conv + 1x1-reduce are all folded into w_big; only the max branch
    # needs per-tap work in the kernel.
    slab = slab_ref[0]                                        # (F, TP)
    taps = [slab[s * C:(s + 1) * C, :] for s in pool_slots]
    pmax = _pairwise_max(taps)
    out = (jnp.dot(w_big_ref[...], slab, preferred_element_type=jnp.float32)
           + jnp.dot(w_rm_ref[...], pmax, preferred_element_type=jnp.float32))
    out_ref[0] = out.astype(out_ref.dtype)


# ------------------------------- host glue ---------------------------------

def _ceil_to(v, m):
    return -(-v // m) * m


def _vmem_capacity_bytes():
    try:
        cap = getattr(pltpu.get_tpu_info(), "vmem_capacity_bytes", None)
        if cap:
            return int(cap)
    except Exception:
        pass
    return 64 * 1024 * 1024          # conservative fallback (v7x per-TC VMEM)


def _plan_spatial_tiling(P, N, C, F, vmem_cap):
    """Pick lane tile TP (multiple of 128) and the padded spatial extent."""
    elem = 2                                              # bf16 slab
    per_lane = 2 * F * elem + 2 * C * 4                   # dbl-buffered slab + f32 out
    weight_bytes = 2 * (F * C + C * C) * elem             # dbl-buffered weights
    budget = max(per_lane, int(vmem_cap * 0.45) - weight_bytes)
    tp_max = max(128, min(2048, (budget // per_lane) // 128 * 128))
    p128 = _ceil_to(P, 128)
    tp_max = min(tp_max, p128)

    best_tp, best_pad = 128, p128
    for tp in range(128, tp_max + 1, 128):
        steps = -(-P // tp)
        # Keep >= 2 spatial tiles when batch==1 so both v7x TCs stay busy.
        if N == 1 and p128 > 128 and steps < 2:
            continue
        p_pad = steps * tp
        if p_pad < best_pad or (p_pad == best_pad and tp > best_tp):
            best_tp, best_pad = tp, p_pad
    return best_tp, best_pad


@functools.partial(jax.jit, static_argnames=("kernel_size",))
def combine_pool2d(x, w_conv, w_reduce, *, kernel_size):
    """x: (N, C, H, W) float32 (NCHW, like PyTorch).  Returns (N, C, Ho, Wo)."""
    N, C, H, W = x.shape
    k = kernel_size
    assert k >= 2, "Conv2d(4, stride=k, pad=1) geometry requires kernel_size >= 2"
    assert H % k == 0 and W % k == 0, "H, W must be divisible by kernel_size"
    assert w_conv.shape == (C, C, 4, 4), "conv_pool weight must be (C, C, 4, 4)"
    assert w_reduce.shape[:2] == (C, 3 * C), "reduce weight must be (C, 3C, 1, 1)"

    Ho, Wo = H // k, W // k
    P = Ho * Wo
    kk = k * k
    cdt = jnp.bfloat16

    # --- im2col for Conv2d(C, C, 4, stride=k, padding=1) -------------------
    # Transposed layout (N, 16*C, P): feature = tap*C + c_in, spatial last.
    xpad = jnp.pad(x, ((0, 0), (0, 0), (1, 1), (1, 1)))
    taps = []
    for kh in range(4):
        for kw in range(4):
            taps.append(
                lax.slice(xpad,
                          (0, 0, kh, kw),
                          (N, C, kh + k * (Ho - 1) + 1, kw + k * (Wo - 1) + 1),
                          (1, 1, k, k)))
    slab = jnp.stack(taps, axis=1).reshape(N, 16 * C, P)

    # --- weight folding (all linear branches -> one GEMM weight) -----------
    wr = w_reduce.reshape(C, 3 * C)
    w_ra = wr[:, 0 * C:1 * C]                          # avg branch (f32)
    w_rm = wr[:, 1 * C:2 * C].astype(cdt)              # max branch
    w_rc = wr[:, 2 * C:3 * C]                          # conv branch (f32)
    # im2col weight with feature order (tap, c_in) matching the slab.
    w_im2col = w_conv.transpose(2, 3, 1, 0).reshape(16 * C, C)
    w_big = jnp.dot(w_rc, w_im2col.T)                  # (C, 16C), f32

    pool_from_conv = k <= 3
    if pool_from_conv:
        # pool tap (dy, dx) == im2col tap (dy+1, dx+1) of the padded window;
        # fold the (linear) avg branch straight into those weight columns.
        pool_slots = tuple((dy + 1) * 4 + (dx + 1)
                           for dy in range(k) for dx in range(k))
        for s in pool_slots:
            w_big = w_big.at[:, s * C:(s + 1) * C].add(w_ra / kk)
    else:
        # k > 3: pooling taps are a pure permutation of x (no duplication);
        # append them to the slab and fold avg into the appended columns.
        xp = x.reshape(N, C, Ho, k, Wo, k)
        pool_taps = xp.transpose(0, 3, 5, 1, 2, 4).reshape(N, kk * C, P)
        slab = jnp.concatenate([slab, pool_taps], axis=1)
        w_big = jnp.concatenate([w_big, jnp.tile(w_ra / kk, (1, kk))], axis=1)
        pool_slots = tuple(16 + s for s in range(kk))

    F = slab.shape[1]
    w_big = w_big.astype(cdt)

    # --- tiling / grid / VMEM budget ----------------------------------------
    vmem_cap = _vmem_capacity_bytes()
    TP, P_pad = _plan_spatial_tiling(P, N, C, F, vmem_cap)
    slab = jnp.pad(slab, ((0, 0), (0, 0), (0, P_pad - P))).astype(cdt)
    grid = (N, P_pad // TP)

    slab_spec = pl.BlockSpec((1, F, TP), lambda n, p: (n, 0, p))
    wbig_spec = pl.BlockSpec((C, F), lambda n, p: (0, 0))
    wrm_spec = pl.BlockSpec((C, C), lambda n, p: (0, 0))
    out_spec = pl.BlockSpec((1, C, TP), lambda n, p: (n, 0, p))

    elem = jnp.dtype(cdt).itemsize
    need = (2 * F * TP * elem                       # double-buffered slab block
            + 2 * C * TP * 4                        # double-buffered f32 out block
            + 2 * (F * C + C * C) * elem            # double-buffered weights
            + (2 << 20))                            # internal scratch margin
    vmem_limit = int(min(vmem_cap, max(need, 16 << 20)))

    cparams = pltpu.CompilerParams(
        dimension_semantics=("parallel", "parallel"),
        vmem_limit_bytes=vmem_limit,
        # Let XLA fuse the im2col producer into the slab operand instead of
        # round-tripping the duplicated slab through HBM (kernel is HBM-bound).
        allow_input_fusion=[True, False, False])

    kernel = functools.partial(_combine_pool_kernel,
                               pool_slots=pool_slots, C=C)
    out_flat = pl.pallas_call(
        kernel,
        out_shape=jax.ShapeDtypeStruct((N, C, P_pad), jnp.float32),
        grid=grid,
        in_specs=[slab_spec, wbig_spec, wrm_spec],
        out_specs=out_spec,
        compiler_params=cparams,
    )(slab, w_big, w_rm)

    # (N, C, P) is already channels-first; drop lane padding, unflatten spatial.
    return out_flat[:, :, :P].reshape(N, C, Ho, Wo)


# ------------------------------- reference ---------------------------------

def _reference(x, w_conv, w_reduce, kernel_size):
    """Pure-JAX f32 replica of the PyTorch forward (for verification)."""
    k = kernel_size
    win = (1, 1, k, k)
    avg = lax.reduce_window(x, 0.0, lax.add, win, win, "VALID") / (k * k)
    mx = lax.reduce_window(x, -jnp.inf, lax.max, win, win, "VALID")
    cv = lax.conv_general_dilated(
        x, w_conv, window_strides=(k, k), padding=((1, 1), (1, 1)),
        dimension_numbers=("NCHW", "OIHW", "NCHW"))
    cat = jnp.concatenate([avg, mx, cv], axis=1)
    return lax.conv_general_dilated(
        cat, w_reduce, window_strides=(1, 1), padding="VALID",
        dimension_numbers=("NCHW", "OIHW", "NCHW"))


if __name__ == "__main__":
    out_dim = 4                     # input channels must equal out_dim
    N, C, H, W = 2, out_dim, 16, 16

    key = jax.random.PRNGKey(0)
    kx, kw1, kw2 = jax.random.split(key, 3)
    x = jax.random.normal(kx, (N, C, H, W), dtype=jnp.float32)
    # Deterministic synthetic parameters (shapes from the module's __init__).
    w_conv = jax.random.normal(kw1, (out_dim, out_dim, 4, 4), jnp.float32) * 0.1
    w_reduce = jax.random.normal(kw2, (out_dim, 3 * out_dim, 1, 1), jnp.float32) * 0.1

    # k=2 exercises the pool-from-im2col (fused) path; k=4 the appended-taps path.
    for ks in (2, 4):
        out = jax.block_until_ready(
            combine_pool2d(x, w_conv, w_reduce, kernel_size=ks))
        ref = _reference(x, w_conv, w_reduce, ks)
        assert out.shape == (N, out_dim, H // ks, W // ks)
        # bf16 slab/weight casts vs the f32 reference -> loosened tolerance.
        assert jnp.allclose(out, ref, atol=3e-2, rtol=3e-2), \
            f"mismatch vs reference (kernel_size={ks})"

    print("KERNEL_OK")
</pallas_src>

<mosaic_0001>
module attributes {stable_mosaic.version = 11 : i64} {
  func.func @_combine_pool_kernel(%arg0: i32, %arg1: i32, %arg2: memref<1x64x128xbf16, #tpu.memory_space<vmem>>, %arg3: memref<4x64xbf16, #tpu.memory_space<vmem>>, %arg4: memref<4x4xbf16, #tpu.memory_space<vmem>>, %arg5: memref<1x4x128xf32, #tpu.memory_space<vmem>>) attributes {dimension_semantics = [#tpu.dimension_semantics<parallel>, #tpu.dimension_semantics<parallel>], iteration_bounds = array<i64: 2, 1>, scalar_prefetch = 0 : i64, scratch_operands = 0 : i64, tpu.core_type = #tpu.core_type<tc>, window_params = [{transform_indices = @transform_0, window_bounds = array<i64: 1, 64, 128>}, {pipeline_mode = #tpu.pipeline_mode<synchronous>, transform_indices = @transform_1, window_bounds = array<i64: 4, 64>}, {pipeline_mode = #tpu.pipeline_mode<synchronous>, transform_indices = @transform_2, window_bounds = array<i64: 4, 4>}, {transform_indices = @transform_3, window_bounds = array<i64: 1, 4, 128>}]} {
    %c0 = arith.constant 0 : index
    %c0_0 = arith.constant 0 : index
    %c0_1 = arith.constant 0 : index
    %0 = vector.load %arg2[%c0, %c0_0, %c0_1] : memref<1x64x128xbf16, #tpu.memory_space<vmem>>, vector<1x64x128xbf16>
    %1 = vector.shape_cast %0 : vector<1x64x128xbf16> to vector<64x128xbf16>
    %2 = vector.extract_strided_slice %1 {offsets = [20, 0], sizes = [4, 128], strides = [1, 1]} : vector<64x128xbf16> to vector<4x128xbf16>
    %3 = vector.extract_strided_slice %1 {offsets = [24, 0], sizes = [4, 128], strides = [1, 1]} : vector<64x128xbf16> to vector<4x128xbf16>
    %4 = vector.extract_strided_slice %1 {offsets = [36, 0], sizes = [4, 128], strides = [1, 1]} : vector<64x128xbf16> to vector<4x128xbf16>
    %5 = vector.extract_strided_slice %1 {offsets = [40, 0], sizes = [4, 128], strides = [1, 1]} : vector<64x128xbf16> to vector<4x128xbf16>
    %6 = arith.maximumf %2, %3 : vector<4x128xbf16>
    %7 = arith.maximumf %4, %5 : vector<4x128xbf16>
    %8 = arith.maximumf %6, %7 : vector<4x128xbf16>
    %c0_2 = arith.constant 0 : index
    %c0_3 = arith.constant 0 : index
    %9 = vector.load %arg3[%c0_2, %c0_3] : memref<4x64xbf16, #tpu.memory_space<vmem>>, vector<4x64xbf16>
    %cst = arith.constant dense<0.000000e+00> : vector<4x128xf32>
    %10 = tpu.matmul %9, %1, %cst {dimension_numbers = #tpu.dot_dimension_numbers<[1], [0], [0], [1], [0, 0, 1, 1], [], []>} : vector<4x64xbf16>, vector<64x128xbf16>, vector<4x128xf32> -> vector<4x128xf32>
    %c0_4 = arith.constant 0 : index
    %c0_5 = arith.constant 0 : index
    %11 = vector.load %arg4[%c0_4, %c0_5] : memref<4x4xbf16, #tpu.memory_space<vmem>>, vector<4x4xbf16>
    %cst_6 = arith.constant dense<0.000000e+00> : vector<4x128xf32>
    %12 = tpu.matmul %11, %8, %cst_6 {dimension_numbers = #tpu.dot_dimension_numbers<[1], [0], [0], [1], [0, 0, 1, 1], [], []>} : vector<4x4xbf16>, vector<4x128xbf16>, vector<4x128xf32> -> vector<4x128xf32>
    %13 = arith.addf %10, %12 : vector<4x128xf32>
    %c0_7 = arith.constant 0 : index
    %c0_8 = arith.constant 0 : index
    %c0_9 = arith.constant 0 : index
    %14 = vector.load %arg5[%c0_7, %c0_8, %c0_9] : memref<1x4x128xf32, #tpu.memory_space<vmem>>, vector<1x4x128xf32>
    %15 = vector.shape_cast %14 : vector<1x4x128xf32> to vector<4x128xf32>
    %16 = vector.shape_cast %13 : vector<4x128xf32> to vector<1x4x128xf32>
    tpu.vector_store %arg5[%c0_7, %c0_8, %c0_9], %16 {strides = array<i32>} : memref<1x4x128xf32, #tpu.memory_space<vmem>>, vector<1x4x128xf32>,
    return
  }
  func.func @transform_0(%arg0: i32, %arg1: i32) -> (i32, i32, i32) {
    %c0_i32 = arith.constant 0 : i32
    %c0_i32_0 = arith.constant 0 : i32
    return %arg0, %c0_i32, %arg1 : i32, i32, i32
  }
  func.func @transform_1(%arg0: i32, %arg1: i32) -> (i32, i32) {
    %c0_i32 = arith.constant 0 : i32
    %c0_i32_0 = arith.constant 0 : i32
    %c0_i32_1 = arith.constant 0 : i32
    return %c0_i32, %c0_i32_0 : i32, i32
  }
  func.func @transform_2(%arg0: i32, %arg1: i32) -> (i32, i32) {
    %c0_i32 = arith.constant 0 : i32
    %c0_i32_0 = arith.constant 0 : i32
    %c0_i32_1 = arith.constant 0 : i32
    return %c0_i32, %c0_i32_0 : i32, i32
  }
  func.func @transform_3(%arg0: i32, %arg1: i32) -> (i32, i32, i32) {
    %c0_i32 = arith.constant 0 : i32
    %c0_i32_0 = arith.constant 0 : i32
    return %arg0, %c0_i32, %arg1 : i32, i32, i32
  }
}

</mosaic_0001>

<bundles_post_ra>
// kernel: combine_pool2d.2
= control target key start
LH: loop header
LB: loop body
LE: loop exit
PB: predicated region body
PF: predicated region fallthrough
CT: control target
= control target key end

     0   :  { %s822_s17 = smov 0   ;;  %s824_s18 = smov 0   ;;  %s896_s0 = inlined_call_operand.vmem [shape: bf16[4,64], index: 0, kind: input, shape index: {}]   ;;  %s897_s1 = inlined_call_operand.vmem [shape: bf16[4,4], index: 1, kind: input, shape index: {}]   ;;  %s898_s2 = inlined_call_operand.vmem [shape: bf16[2,64,64], index: 2, kind: input, shape index: {}]   ;;  %s899_s3 = inlined_call_operand.<no memory space> [shape: bf16[], index: 3, kind: input, shape index: {}]   ;;  %s900_s4 = inlined_call_operand.vmem [shape: f32[2,4,128], index: 4, kind: output, shape index: {}]  }
   0x1   :  { %v9_v0 = vstv %s899_s3  ;;  %s826_s19 = smov 0  }
   0x2   :  { %v820_v1 = vunpack.i.l.bf16 %v9_v0 }
   0x3 LB: > { %s31_s3 = sadd.s32 1, %s784_s18  ;;  %p690_p0 = scmp.ge.s32.totalorder %s788_s19, 1  ;;  %s788_s19 = sphi %s826_s19, %s19_s19   ;;  %s784_s18 = sphi %s824_s18, %s902_s18   ;;  %s780_s17 = sphi %s822_s17, %s901_s17  }
   0x4   : > { %p33_p1 = scmp.ge.s32.totalorder %s31_s3, 2  ;;  %p166_p2 = scmp.lt.s32.totalorder %s788_s19, 3 }
   0x6   : > { %s904_s3 = smov (%p33_p1, %s31_s3), 0  ;;  %p167_p3 = pnand %p690_p0, %p166_p2 }
   0x8   : > { %170 = sbr.rel (%p167_p3) target bundleno = 247 (0xf7), region = 32 }
   0xd   : > { %p199_p4 = scmp.lt.s32.totalorder %s780_s17, 1  ;;  %v236_v2 = vlaneseq  ;;  %v790_v3 = vmov 0.0   ;;  %vm791_vm0 = vmmov 0   ;;  %vm498_vm2 = vcmask 1041408   ;;  %v489_v49 = vld [vmem:[%s897_s1] sm:$0x3] }
   0xe   : > { %724 = vmatprep.subr.bf16.mxu1 %v790_v3  ;;  %718 = vmatprep.subr.bf16.mxu0 %v790_v3  ;;  %vm494_vm3 = vcmask 31744   ;;  %v488_v50 = vld [vmem:[%s896_s0] sm:$0x3]  ;;  %vm564_vm4 = vcmask 523264  }
   0xf   : > { %s906_s17 = smov (!%p199_p4, %s780_s17), 1  ;;  %v237_v4 = vand.u32 127, %v236_v2  ;;  %720 = vmatprep.mubr.msk.bf16.mxu0 %vm791_vm0, %v790_v3  ;;  %732 = vmatprep.mubr.msk.bf16.mxu1 %vm791_vm0, %v790_v3 }
  0x10   : > { %s710_s20 = sshll.u32 %s906_s17, 5  ;;  %s693_s28 = sshll.u32 %s906_s17, 2 }
  0x11   : > { %s206_s23 = scalar_lea.vmem %s898_s2, %s710_s20  ;;  %vm240_vm1 = vcmp.lt.s32.totalorder %v237_v4, 64  ;;  %s215_s5 = scalar_lea.vmem %s900_s4, %s693_s28 }
  0x12   : > { %v699_v5 = vld [vmem:[%s206_s23 + $0x18] sm:$0xff]   ;;  %v697_v6 = vld [vmem:[%s206_s23 + $0x10] sm:$0xff]   ;;  %v695_v7 = vld [vmem:[%s206_s23 + $0x8] sm:$0xff]  }
  0x13   : > { %v420_v8 = vunpack.c.l.bf16 %v699_v5  ;;  %v452_v9 = vunpack.c.h.bf16 %v699_v5  ;;  %v356_v10 = vunpack.c.l.bf16 %v697_v6  ;;  %v388_v11 = vunpack.c.h.bf16 %v697_v6  ;;  %v228_v12 = vld [vmem:[%s206_s23] sm:$0xff]  }
  0x14   : > { %v292_v13 = vunpack.c.l.bf16 %v695_v7  ;;  %v324_v14 = vunpack.c.h.bf16 %v695_v7  ;;  %v229_v15 = vunpack.c.l.bf16 %v228_v12  ;;  %v260_v16 = vunpack.c.h.bf16 %v228_v12 }
  0x15   : > { %v432_v17 = vsel %vm240_vm1, %v420_v8, %v820_v1  ;;  %v464_v18 = vsel %vm240_vm1, %v452_v9, %v820_v1  ;;  %v368_v19 = vsel %vm240_vm1, %v356_v10, %v820_v1  ;;  %v400_v20 = vsel %vm240_vm1, %v388_v11, %v820_v1 }
  0x16   : > { %v434_v21 = vpack.c.bf16 %v790_v3, %v432_v17  ;;  %v466_v22 = vpack.c.bf16 %v790_v3, %v464_v18  ;;  %v370_v23 = vpack.c.bf16 %v790_v3, %v368_v19  ;;  %v402_v24 = vpack.c.bf16 %v790_v3, %v400_v20 }
  0x17   : > { %v304_v25 = vsel %vm240_vm1, %v292_v13, %v820_v1  ;;  %v336_v26 = vsel %vm240_vm1, %v324_v14, %v820_v1  ;;  %v241_v27 = vsel %vm240_vm1, %v229_v15, %v820_v1  ;;  %v272_v28 = vsel %vm240_vm1, %v260_v16, %v820_v1 }
  0x18   : > { %437 = vst [vmem:[#allocation7 + $0x18] sm:$0xf] %v434_v21  ;;  %469 = vst [vmem:[#allocation7 + $0x1c] sm:$0xf] %v466_v22  ;;  %v306_v29 = vpack.c.bf16 %v790_v3, %v304_v25  ;;  %v338_v30 = vpack.c.bf16 %v790_v3, %v336_v26  ;;  %v242_v31 = vpack.c.bf16 %v790_v3, %v241_v27 }
  0x19   : > { %373 = vst [vmem:[#allocation7 + $0x10] sm:$0xf] %v370_v23  ;;  %405 = vst [vmem:[#allocation7 + $0x14] sm:$0xf] %v402_v24  ;;  %v274_v32 = vpack.c.bf16 %v790_v3, %v272_v28 }
  0x1a   : > { %309 = vst [vmem:[#allocation7 + $0x8] sm:$0xf] %v306_v29  ;;  %341 = vst [vmem:[#allocation7 + $0xc] sm:$0xf] %v338_v30 }
  0x1b   : > { %245 = vst [vmem:[#allocation7] sm:$0xf] %v242_v31  ;;  %277 = vst [vmem:[#allocation7 + $0x4] sm:$0xf] %v274_v32 }
  0x1f   : > { %v762_v33 = vld [vmem:[#allocation7 + $0x18] sm:$0xff]  }
  0x20   : > { %v475_v34 = vld [vmem:[#allocation7 + $0x10] sm:$0xf]  ;;  %v476_v35 = vld [vmem:[#allocation7 + $0x14] sm:$0xf]  ;;  %725 = vmatpush3.bf16.msra.mxu1 %v762_v33 }
  0x21   : > { %v484_v36 = vrot.slane %v476_v35, 6  ;;  %v705_v37 = vcombine.low %v475_v34, %v476_v35  ;;  %v473_v38 = vld [vmem:[#allocation7 + $0x8] sm:$0xf]  ;;  %v474_v39 = vld [vmem:[#allocation7 + $0xc] sm:$0xf]  ;;  %726 = vmatprep.subr.bf16.mxu1 %v790_v3 }
  0x22   : > { %v480_v40 = vrot.slane %v474_v39, 6  ;;  %v704_v43 = vcombine.low %v473_v38, %v474_v39  ;;  %v765_v46 = vld [vmem:[#allocation7] sm:$0xff]  }
  0x23   : > { %v486_v41 = vmax.bf16 %v484_v36, %v475_v34 }
  0x24   : > { %v482_v42 = vmax.bf16 %v480_v40, %v473_v38  ;;  %727 = vmatpush3.bf16.msra.mxu1 %v705_v37 }
  0x25   : > { %728 = vmatprep.subr.bf16.mxu1 %v790_v3 }
  0x26   : > { %v487_v44 = vmax.bf16 %v486_v41, %v482_v42 }
  0x28   : > { %v701_v45 = vcombine.low %v487_v44, %v487_v44  ;;  %729 = vmatpush3.bf16.msra.mxu1 %v704_v43 }
  0x29   : > { %730 = vmatprep.subr.bf16.mxu1 %v790_v3 }
  0x2a   : > { %v493_v47 = vrot.slane %v701_v45, 2 }
  0x2c   : > { %v500_v48 = vsel %vm498_vm2, %v493_v47, 0  ;;  %731 = vmatpush3.bf16.msra.mxu1 %v765_v46 }
  0x2d   : > { %719 = vmatpush3.bf16.msra.mxu0 %v500_v48 }
  0x2f   : > { %733 = vmatmul.mubr.msk.bf16.vlgmr.msra.gmra.mxu1 %vm564_vm4, %v488_v50 }
  0x30   : > { %721 = vmatmul.mubr.msk.bf16.vlgmr.msra.gmra.mxu0 %vm494_vm3, %v489_v49 }
  0xef   : > { %v602_v52 = vpop.f32.mrf.mxu1 }
  0xf0   : > { %v536_v51 = vpop.f32.mrf.mxu0 }
  0xf1   : > { %v603_v53 = vadd.f32 %v602_v52, %v536_v51  ;;  %v734_v55 = vpop.f32.mrf.mxu1 }
  0xf2   : > { %v722_v54 = vpop.f32.mrf.mxu0 }
  0xf3   : > { %608 = vst [vmem:[%s215_s5] sm:$0xf] %v603_v53  ;;  %v605_v57 = vpop.f32.mrf.mxu1 }
  0xf4   : > { %v539_v56 = vpop.f32.mrf.mxu0 }
  0xf5   : > { %v735_v59 = vpop.f32.mrf.mxu1 }
  0xf6   : > { %v723_v58 = vpop.f32.mrf.mxu0 }
  0xf7 PF: > { %s19_s19 = sadd.s32 1, %s788_s19   ;;  %s901_s17 = smov %s784_s18 }
  0xf8   : > { %p16_p5 = scmp.ge.s32.totalorder %s19_s19, 4   ;;  %s902_s18 = smov %s904_s3 }
  0xfa   :  { %18 = sbr.rel (!%p16_p5) target bundleno = 3 (0x3), region = 76 }

</bundles_post_ra>
